<compile_context>
chip_gen: v5e
topology: v5e:2x2
jax: 0.10.0
libtpu: 0.0.40
codegen_flags: <defaults>
</compile_context>

<pallas_src>
import jax
import jax.numpy as jnp
from jax import lax
from jax.experimental import pallas as pl
from jax.experimental.pallas import tpu as pltpu


# ----------------------------------------------------------------------------
# Kernel
# ----------------------------------------------------------------------------
def dblock_kernel(x_ref, w12_ref, b12_ref, wout_ref, bout_ref, out_ref):
    """One batch tile, feature-major: fused gate matmul + gating + fused heads."""
    H = wout_ref.shape[1]
    mm_dtype = w12_ref.dtype

    # Cast the activation tile in-kernel (VPU work hidden under DMA/MXU slack;
    # avoids a standalone XLA cast pass over x in HBM).
    x = x_ref[...].astype(mm_dtype)

    # Fused gate matmul: (2H, D_in) . (TB, D_in)^T -> (2H, TB), f32 accumulate.
    # Contraction over the last dim of both operands (native A @ B^T MXU form).
    h = lax.dot_general(
        w12_ref[...], x,
        dimension_numbers=(((1,), (1,)), ((), ())),
        preferred_element_type=jnp.float32)
    h = h + b12_ref[...]                      # (2H, 1) bias broadcast over lanes

    # Gate split along sublanes (rows :H / H:, H % 8 == 0) -> no mid-lane slice.
    # Elementwise/transcendental math stays f32 (v5e EUP/VPU have no bf16 path).
    t = jnp.tanh(h[:H, :]) * jax.nn.sigmoid(h[H:, :])

    # Fused output heads: (2*D_out, H) . (H, TB) -> (2*D_out, TB) slab.
    out = jnp.dot(wout_ref[...], t.astype(mm_dtype),
                  preferred_element_type=jnp.float32)
    out_ref[...] = (out + bout_ref[...]).astype(out_ref.dtype)


# ----------------------------------------------------------------------------
# One-time parameter preparation (outside the hot path)
# ----------------------------------------------------------------------------
def prepare_dblock_params(params, matmul_dtype=jnp.bfloat16):
    """Fuse the paired layers once. Weights keep the PyTorch (out, in)
    orientation, which is exactly the feature-major layout the kernel wants
    (no transpose needed). Biases stay f32.

    matmul_dtype=jnp.bfloat16 (default) trades ~bf16 rounding of the matmul
    operands for MXU throughput; matmul_dtype=jnp.float32 is the escape hatch
    that reproduces the f32 PyTorch semantics exactly."""
    w12 = jnp.concatenate([params["w1"], params["w2"]], axis=0)      # (2H, D_in)
    b12 = jnp.concatenate([params["b1"], params["b2"]])[:, None]     # (2H, 1)
    wout = jnp.concatenate([params["wmu"], params["wls"]], axis=0)   # (2*D_out, H)
    bout = jnp.concatenate([params["bmu"], params["bls"]])[:, None]  # (2*D_out, 1)
    return {
        "w12": w12.astype(matmul_dtype),
        "b12": b12.astype(jnp.float32),
        "wout": wout.astype(matmul_dtype),
        "bout": bout.astype(jnp.float32),
    }


# ----------------------------------------------------------------------------
# Tile selection
# ----------------------------------------------------------------------------
def _select_batch_tile(B, batch_tile, min_split_rows):
    """Pick rows per grid step.

    * Small B: a single full-extent tile (block dim == array dim, any B).
    * Large B: a multiple of 128 (keeps the (feature, batch) output block
      lane-dense and the x block sublane-aligned), capped at `batch_tile`, and
      sized so the grid has >= 2 steps (v7x megacore gets work on both TCs)
      with >= `min_split_rows` rows each so per-step overhead stays hidden."""
    batch_tile = max(128, (int(batch_tile) // 128) * 128)
    if B <= 128 or B < 2 * min_split_rows:
        return B, 1
    tile = min(batch_tile, pl.cdiv(B, 2))
    tile = max(128, (tile // 128) * 128)
    return tile, pl.cdiv(B, tile)


# ----------------------------------------------------------------------------
# Forward wrappers
# ----------------------------------------------------------------------------
def dblock_forward_fused(x, prep, *, batch_tile=4096, min_split_rows=2048,
                         out_dtype=None):
    """x: (B, D_in). Returns the fused FEATURE-MAJOR slab (2*D_out, B):
    rows [:D_out] are mu, rows [D_out:] are logsigma. Consuming this slab
    directly keeps the lane-dense layout all the way into the next op.
    out_dtype=jnp.bfloat16 halves output HBM writeback if downstream allows."""
    B, D_in = x.shape
    w12, b12 = prep["w12"], prep["b12"]
    wout, bout = prep["wout"], prep["bout"]
    H2 = w12.shape[0]            # 2 * hidden
    O2, H = wout.shape           # 2 * output, hidden
    out_dtype = x.dtype if out_dtype is None else out_dtype

    TB, nb = _select_batch_tile(B, batch_tile, min_split_rows)

    return pl.pallas_call(
        dblock_kernel,
        out_shape=jax.ShapeDtypeStruct((O2, B), out_dtype),
        grid=(nb,),
        in_specs=[
            pl.BlockSpec((TB, D_in), lambda i: (i, 0)),   # activation tiles advance
            pl.BlockSpec((H2, D_in), lambda i: (0, 0)),   # fused gate weights resident
            pl.BlockSpec((H2, 1), lambda i: (0, 0)),
            pl.BlockSpec((O2, H), lambda i: (0, 0)),      # fused head weights resident
            pl.BlockSpec((O2, 1), lambda i: (0, 0)),
        ],
        out_specs=pl.BlockSpec((O2, TB), lambda i: (0, i)),  # batch on 128-lane axis
        compiler_params=pltpu.CompilerParams(
            dimension_semantics=("parallel",),            # shards steps across v7x TCs
        ),
    )(x, w12, b12, wout, bout)


def dblock_forward(x, prep, **kwargs):
    """PyTorch-parity API: returns (mu, logsigma), each (B, D_out).
    The transpose/split here is convenience for standalone use; prefer
    dblock_forward_fused when the consumer can take the fused slab."""
    slab = dblock_forward_fused(x, prep, **kwargs)
    d_out = slab.shape[0] // 2
    return slab[:d_out, :].T, slab[d_out:, :].T


# ----------------------------------------------------------------------------
# Init + references
# ----------------------------------------------------------------------------
def init_dblock_params(key, input_size, hidden_size, output_size):
    """Deterministic synthetic init (PyTorch Linear shape conventions: (out, in))."""
    ks = jax.random.split(key, 8)
    s_in = 1.0 / jnp.sqrt(input_size)
    s_h = 1.0 / jnp.sqrt(hidden_size)
    return {
        "w1":  jax.random.uniform(ks[0], (hidden_size, input_size), jnp.float32, -s_in, s_in),
        "b1":  jax.random.uniform(ks[1], (hidden_size,), jnp.float32, -s_in, s_in),
        "w2":  jax.random.uniform(ks[2], (hidden_size, input_size), jnp.float32, -s_in, s_in),
        "b2":  jax.random.uniform(ks[3], (hidden_size,), jnp.float32, -s_in, s_in),
        "wmu": jax.random.uniform(ks[4], (output_size, hidden_size), jnp.float32, -s_h, s_h),
        "bmu": jax.random.uniform(ks[5], (output_size,), jnp.float32, -s_h, s_h),
        "wls": jax.random.uniform(ks[6], (output_size, hidden_size), jnp.float32, -s_h, s_h),
        "bls": jax.random.uniform(ks[7], (output_size,), jnp.float32, -s_h, s_h),
    }


def dblock_reference(x, params):
    """Pure-JAX f32 reference matching the PyTorch forward exactly."""
    hp = lax.Precision.HIGHEST
    t = jnp.tanh(jnp.dot(x, params["w1"].T, precision=hp) + params["b1"]) * \
        jax.nn.sigmoid(jnp.dot(x, params["w2"].T, precision=hp) + params["b2"])
    mu = jnp.dot(t, params["wmu"].T, precision=hp) + params["bmu"]
    logsigma = jnp.dot(t, params["wls"].T, precision=hp) + params["bls"]
    return mu, logsigma


def dblock_reference_quantized(x, params, matmul_dtype=jnp.bfloat16):
    """Reference seeing the SAME rounded matmul operands as the kernel
    (f32 accumulation), isolating kernel correctness from the bf16 cast."""
    hp = lax.Precision.HIGHEST
    q = lambda a: a.astype(matmul_dtype).astype(jnp.float32)
    xq = q(x)
    h1 = jnp.dot(xq, q(params["w1"]).T, precision=hp) + params["b1"]
    h2 = jnp.dot(xq, q(params["w2"]).T, precision=hp) + params["b2"]
    t = jnp.tanh(h1) * jax.nn.sigmoid(h2)
    tq = q(t)
    mu = jnp.dot(tq, q(params["wmu"]).T, precision=hp) + params["bmu"]
    logsigma = jnp.dot(tq, q(params["wls"]).T, precision=hp) + params["bls"]
    return mu, logsigma


# ----------------------------------------------------------------------------
if __name__ == "__main__":
    key = jax.random.PRNGKey(0)
    k_x, k_p = jax.random.split(key)

    B, INPUT, HIDDEN, OUTPUT = 8, 32, 64, 16
    x = jax.random.normal(k_x, (B, INPUT), jnp.float32)
    params = init_dblock_params(k_p, INPUT, HIDDEN, OUTPUT)

    # --- default bf16-matmul path (single full-extent tile) ------------------
    prep = prepare_dblock_params(params, matmul_dtype=jnp.bfloat16)
    mu, logsigma = dblock_forward(x, prep)
    jax.block_until_ready((mu, logsigma))

    mu_q, ls_q = dblock_reference_quantized(x, params, jnp.bfloat16)
    assert jnp.allclose(mu, mu_q, atol=2e-3, rtol=2e-3)
    assert jnp.allclose(logsigma, ls_q, atol=2e-3, rtol=2e-3)

    mu_f, ls_f = dblock_reference(x, params)
    assert jnp.allclose(mu, mu_f, atol=3e-2, rtol=3e-2)
    assert jnp.allclose(logsigma, ls_f, atol=3e-2, rtol=3e-2)

    # --- f32 escape hatch (exact PyTorch semantics; tolerance only covers
    #     possible default matmul precision differences inside/outside Pallas)
    prep_f32 = prepare_dblock_params(params, matmul_dtype=jnp.float32)
    mu32, ls32 = dblock_forward(x, prep_f32)
    jax.block_until_ready((mu32, ls32))
    assert jnp.allclose(mu32, mu_f, atol=1e-2, rtol=1e-2)
    assert jnp.allclose(ls32, ls_f, atol=1e-2, rtol=1e-2)

    # --- multi-step grid path: resident weights, lane-dense 128-row tiles,
    #     ragged final block handled by masked stores (no jnp.pad copy) -------
    B2 = 300
    x2 = jax.random.normal(jax.random.PRNGKey(1), (B2, INPUT), jnp.float32)
    mu2, ls2 = dblock_forward(x2, prep, batch_tile=128, min_split_rows=64)
    jax.block_until_ready((mu2, ls2))
    mu2_q, ls2_q = dblock_reference_quantized(x2, params, jnp.bfloat16)
    assert jnp.allclose(mu2, mu2_q, atol=2e-3, rtol=2e-3)
    assert jnp.allclose(ls2, ls2_q, atol=2e-3, rtol=2e-3)

    print("KERNEL_OK")
</pallas_src>

<mosaic_0001>
module attributes {stable_mosaic.version = 11 : i64} {
  func.func @dblock_kernel(%arg0: i32, %arg1: memref<8x32xf32, #tpu.memory_space<vmem>>, %arg2: memref<128x32xbf16, #tpu.memory_space<vmem>>, %arg3: memref<128x1xf32, #tpu.memory_space<vmem>>, %arg4: memref<32x64xbf16, #tpu.memory_space<vmem>>, %arg5: memref<32x1xf32, #tpu.memory_space<vmem>>, %arg6: memref<32x8xf32, #tpu.memory_space<vmem>>) attributes {dimension_semantics = [#tpu.dimension_semantics<parallel>], iteration_bounds = array<i64: 1>, scalar_prefetch = 0 : i64, scratch_operands = 0 : i64, tpu.core_type = #tpu.core_type<tc>, window_params = [{transform_indices = @transform_0, window_bounds = array<i64: 8, 32>}, {pipeline_mode = #tpu.pipeline_mode<synchronous>, transform_indices = @transform_1, window_bounds = array<i64: 128, 32>}, {pipeline_mode = #tpu.pipeline_mode<synchronous>, transform_indices = @transform_2, window_bounds = array<i64: 128, 1>}, {pipeline_mode = #tpu.pipeline_mode<synchronous>, transform_indices = @transform_3, window_bounds = array<i64: 32, 64>}, {pipeline_mode = #tpu.pipeline_mode<synchronous>, transform_indices = @transform_4, window_bounds = array<i64: 32, 1>}, {transform_indices = @transform_5, window_bounds = array<i64: 32, 8>}]} {
    %c0 = arith.constant 0 : index
    %c0_0 = arith.constant 0 : index
    %0 = vector.load %arg1[%c0, %c0_0] : memref<8x32xf32, #tpu.memory_space<vmem>>, vector<8x32xf32>
    %1 = arith.truncf %0 : vector<8x32xf32> to vector<8x32xbf16>
    %c0_1 = arith.constant 0 : index
    %c0_2 = arith.constant 0 : index
    %2 = vector.load %arg2[%c0_1, %c0_2] : memref<128x32xbf16, #tpu.memory_space<vmem>>, vector<128x32xbf16>
    %cst = arith.constant dense<0.000000e+00> : vector<128x8xf32>
    %3 = tpu.matmul %2, %1, %cst {dimension_numbers = #tpu.dot_dimension_numbers<[1], [1], [0], [0], [0, 0, 1, 0], [], []>} : vector<128x32xbf16>, vector<8x32xbf16>, vector<128x8xf32> -> vector<128x8xf32>
    %c0_3 = arith.constant 0 : index
    %c0_4 = arith.constant 0 : index
    %4 = vector.load %arg3[%c0_3, %c0_4] : memref<128x1xf32, #tpu.memory_space<vmem>>, vector<128x1xf32>
    %5 = vector.broadcast %4 : vector<128x1xf32> to vector<128x8xf32>
    %6 = arith.addf %3, %5 : vector<128x8xf32>
    %7 = vector.extract_strided_slice %6 {offsets = [0, 0], sizes = [64, 8], strides = [1, 1]} : vector<128x8xf32> to vector<64x8xf32>
    %8 = math.tanh %7 : vector<64x8xf32>
    %9 = vector.extract_strided_slice %6 {offsets = [64, 0], sizes = [64, 8], strides = [1, 1]} : vector<128x8xf32> to vector<64x8xf32>
    %10 = arith.negf %9 : vector<64x8xf32>
    %11 = math.exp %10 : vector<64x8xf32>
    %cst_5 = arith.constant 1.000000e+00 : f32
    %12 = vector.broadcast %cst_5 : f32 to vector<64x8xf32>
    %13 = arith.addf %12, %11 : vector<64x8xf32>
    %14 = arith.divf %12, %13 : vector<64x8xf32>
    %15 = arith.mulf %8, %14 : vector<64x8xf32>
    %c0_6 = arith.constant 0 : index
    %c0_7 = arith.constant 0 : index
    %16 = vector.load %arg4[%c0_6, %c0_7] : memref<32x64xbf16, #tpu.memory_space<vmem>>, vector<32x64xbf16>
    %17 = arith.truncf %15 : vector<64x8xf32> to vector<64x8xbf16>
    %cst_8 = arith.constant dense<0.000000e+00> : vector<32x8xf32>
    %18 = tpu.matmul %16, %17, %cst_8 {dimension_numbers = #tpu.dot_dimension_numbers<[1], [0], [0], [1], [0, 0, 1, 1], [], []>} : vector<32x64xbf16>, vector<64x8xbf16>, vector<32x8xf32> -> vector<32x8xf32>
    %c0_9 = arith.constant 0 : index
    %c0_10 = arith.constant 0 : index
    %19 = vector.load %arg5[%c0_9, %c0_10] : memref<32x1xf32, #tpu.memory_space<vmem>>, vector<32x1xf32>
    %20 = vector.broadcast %19 : vector<32x1xf32> to vector<32x8xf32>
    %21 = arith.addf %18, %20 : vector<32x8xf32>
    %c0_11 = arith.constant 0 : index
    %c0_12 = arith.constant 0 : index
    %22 = vector.load %arg6[%c0_11, %c0_12] : memref<32x8xf32, #tpu.memory_space<vmem>>, vector<32x8xf32>
    tpu.vector_store %arg6[%c0_11, %c0_12], %21 {strides = array<i32>} : memref<32x8xf32, #tpu.memory_space<vmem>>, vector<32x8xf32>,
    return
  }
  func.func @transform_0(%arg0: i32) -> (i32, i32) {
    %c0_i32 = arith.constant 0 : i32
    %c0_i32_0 = arith.constant 0 : i32
    return %arg0, %c0_i32 : i32, i32
  }
  func.func @transform_1(%arg0: i32) -> (i32, i32) {
    %c0_i32 = arith.constant 0 : i32
    %c0_i32_0 = arith.constant 0 : i32
    %c0_i32_1 = arith.constant 0 : i32
    return %c0_i32, %c0_i32_0 : i32, i32
  }
  func.func @transform_2(%arg0: i32) -> (i32, i32) {
    %c0_i32 = arith.constant 0 : i32
    %c0_i32_0 = arith.constant 0 : i32
    %c0_i32_1 = arith.constant 0 : i32
    return %c0_i32, %c0_i32_0 : i32, i32
  }
  func.func @transform_3(%arg0: i32) -> (i32, i32) {
    %c0_i32 = arith.constant 0 : i32
    %c0_i32_0 = arith.constant 0 : i32
    %c0_i32_1 = arith.constant 0 : i32
    return %c0_i32, %c0_i32_0 : i32, i32
  }
  func.func @transform_4(%arg0: i32) -> (i32, i32) {
    %c0_i32 = arith.constant 0 : i32
    %c0_i32_0 = arith.constant 0 : i32
    %c0_i32_1 = arith.constant 0 : i32
    return %c0_i32, %c0_i32_0 : i32, i32
  }
  func.func @transform_5(%arg0: i32) -> (i32, i32) {
    %c0_i32 = arith.constant 0 : i32
    %c0_i32_0 = arith.constant 0 : i32
    return %c0_i32, %arg0 : i32, i32
  }
}

</mosaic_0001>

<bundles_post_ra>
// kernel: tpu_custom_call.1
= control target key start
LH: loop header
LB: loop body
LE: loop exit
PB: predicated region body
PF: predicated region fallthrough
CT: control target
= control target key end

     0   :  { %v619_v0 = vmov 0   ;;  %vm175_vm0 = vcmask 261120   ;;  %s947_s2 = inlined_call_operand.vmem [shape: f32[128,1], index: 2, kind: input, shape index: {}]   ;;  %s948_s0 = inlined_call_operand.vmem [shape: f32[8,32], index: 0, kind: input, shape index: {}]   ;;  %s949_s1 = inlined_call_operand.vmem [shape: bf16[128,32], index: 1, kind: input, shape index: {}]   ;;  %s950_s4 = inlined_call_operand.vmem [shape: f32[32,1], index: 4, kind: input, shape index: {}]   ;;  %s951_s3 = inlined_call_operand.vmem [shape: bf16[32,64], index: 3, kind: input, shape index: {}]   ;;  %s952_s5 = inlined_call_operand.vmem [shape: f32[32,8], index: 5, kind: output, shape index: {}]  }
   0x1   :  { %568 = vset.pattern.permute.xlu0 %v619_v0  ;;  %v53_v1 = vld [vmem:[%s947_s2 + $0x70] sm:$0xff]  ;;  %v21_v2 = vld [vmem:[%s948_s0] sm:$0xff]  ;;  %569 = vset.pattern.permute.xlu1 %v619_v0  ;;  %v54_v7 = vld [vmem:[%s947_s2 + $0x78] sm:$0xff] }
   0x2   :  { %v51_v3 = vld [vmem:[%s947_s2 + $0x60] sm:$0xff]  ;;  %127 = vperm.xlu0 %568, %v53_v1   ;;  %v22_v4 = vpack.c.bf16 %v21_v2, %v21_v2  ;;  %570 = vset.pattern.permute.xlu2 %v619_v0  ;;  %v49_v6 = vld [vmem:[%s947_s2 + $0x50] sm:$0xff]  ;;  %v52_v8 = vld [vmem:[%s947_s2 + $0x68] sm:$0xff] }
   0x3   :  { %117 = vperm.xlu1 %569, %v51_v3   ;;  %107 = vperm.xlu2 %570, %v49_v6   ;;  %v555_v9 = vld [vmem:[%s949_s1] sm:$0xff]  ;;  %v558_v10 = vld [vmem:[%s949_s1 + $0x18] sm:$0xff]  ;;  %v561_v11 = vld [vmem:[%s949_s1 + $0x30] sm:$0xff] }
   0x4   :  { %v201_v5 = vsel %vm175_vm0, %v22_v4, 0  ;;  %v50_v12 = vld [vmem:[%s947_s2 + $0x58] sm:$0xff]  ;;  %v47_v13 = vld [vmem:[%s947_s2 + $0x40] sm:$0xff]  ;;  %v48_v14 = vld [vmem:[%s947_s2 + $0x48] sm:$0xff] }
   0x5   :  { %210 = vmatpush.bf16.xpose.msra.mxu0 %v201_v5  ;;  %565 = vmatpush.bf16.xpose.msra.mxu2 %v201_v5  ;;  %v45_v15 = vld [vmem:[%s947_s2 + $0x30] sm:$0xff]  ;;  %v46_v16 = vld [vmem:[%s947_s2 + $0x38] sm:$0xff]  ;;  %v43_v17 = vld [vmem:[%s947_s2 + $0x20] sm:$0xff] }
   0x6   :  { %566 = vmatpush.bf16.xpose.msra.mxu3 %v201_v5  ;;  %v556_v18 = vld [vmem:[%s949_s1 + $0x8] sm:$0xff]  ;;  %v559_v19 = vld [vmem:[%s949_s1 + $0x20] sm:$0xff]  ;;  %v562_v20 = vld [vmem:[%s949_s1 + $0x38] sm:$0xff] }
   0x7   :  { %v44_v21 = vld [vmem:[%s947_s2 + $0x28] sm:$0xff]  ;;  %v41_v22 = vld [vmem:[%s947_s2 + $0x10] sm:$0xff]  ;;  %v42_v23 = vld [vmem:[%s947_s2 + $0x18] sm:$0xff] }
   0x8   :  { %v39_v24 = vld [vmem:[%s947_s2] sm:$0xff]  ;;  %v40_v25 = vld [vmem:[%s947_s2 + $0x8] sm:$0xff]  ;;  %v557_v27 = vld [vmem:[%s949_s1 + $0x10] sm:$0xff] }
   0x9   :  { %v428_v26 = vld [vmem:[%s950_s4] sm:$0xff]  ;;  %v560_v28 = vld [vmem:[%s949_s1 + $0x28] sm:$0xff]  ;;  %v430_v30 = vld [vmem:[%s950_s4 + $0x10] sm:$0xff] }
   0xa   :  { %132 = vperm.xlu0 %568, %v54_v7   ;;  %v429_v29 = vld [vmem:[%s950_s4 + $0x8] sm:$0xff]  ;;  %v431_v31 = vld [vmem:[%s950_s4 + $0x18] sm:$0xff] }
   0xb   :  { %122 = vperm.xlu1 %569, %v52_v8   ;;  %112 = vperm.xlu2 %570, %v50_v12  }
   0xc   :  { %529 = vmatmul.msk.bf16.vlgmr.msra.gmra.mxu0 %vm175_vm0, %v555_v9  ;;  %532 = vmatmul.msk.bf16.vlgmr.msra.gmra.mxu2 %vm175_vm0, %v558_v10 }
   0xd   :  { %535 = vmatmul.msk.bf16.vlgmr.msra.gmra.mxu3 %vm175_vm0, %v561_v11 }
  0x12   :  { %97 = vperm.xlu0 %568, %v47_v13  }
  0x13   :  { %102 = vperm.xlu1 %569, %v48_v14   ;;  %87 = vperm.xlu2 %570, %v45_v15  }
  0x1a   :  { %92 = vperm.xlu0 %568, %v46_v16  }
  0x1b   :  { %77 = vperm.xlu1 %569, %v43_v17   ;;  %82 = vperm.xlu2 %570, %v44_v21  }
  0x1c   :  { %530 = vmatmul.msk.bf16.gmra.mxu0 %vm175_vm0, %v556_v18  ;;  %533 = vmatmul.msk.bf16.gmra.mxu2 %vm175_vm0, %v559_v19 }
  0x1d   :  { %536 = vmatmul.msk.bf16.gmra.mxu3 %vm175_vm0, %v562_v20 }
  0x22   :  { %67 = vperm.xlu0 %568, %v41_v22  }
  0x23   :  { %72 = vperm.xlu1 %569, %v42_v23   ;;  %57 = vperm.xlu2 %570, %v39_v24  }
  0x2a   :  { %62 = vperm.xlu0 %568, %v40_v25  }
  0x2b   :  { %434 = vperm.xlu1 %569, %v428_v26   ;;  %439 = vperm.xlu2 %570, %v429_v29  }
  0x2c   :  { %531 = vmatmul.msk.bf16.gmra.mxu0 %vm175_vm0, %v557_v27  ;;  %534 = vmatmul.msk.bf16.gmra.mxu2 %vm175_vm0, %v560_v28 }
  0x32   :  { %444 = vperm.xlu0 %568, %v430_v30  }
  0x33   :  { %449 = vperm.xlu1 %569, %v431_v31  }
  0x5d   :  { %v108_v36 = vpop.permute.xlu2 %107 }
  0x65   :  { %v750_v46 = vpop.permute.xlu2 %112 }
  0x6d   :  { %v88_v56 = vpop.permute.xlu2 %87 }
  0x74   :  { %v128_v32 = vpop.permute.xlu0 %127 }
  0x75   :  { %v118_v35 = vpop.permute.xlu1 %117  ;;  %v83_v9 = vpop.permute.xlu2 %82 }
  0x7c   :  { %v133_v34 = vpop.permute.xlu0 %132 }
  0x7d   :  { %v123_v43 = vpop.permute.xlu1 %122 }
  0x84   :  { %v98_v41 = vpop.permute.xlu0 %97 }
  0x85   :  { %v103_v60 = vpop.permute.xlu1 %102 }
  0x89   :  { %v746_v33 = vpop.f32.mrf.mxu0 }
  0x8c   :  { %v93_v51 = vpop.permute.xlu0 %92 }
  0x8d   :  { %v78_v18 = vpop.permute.xlu1 %77 }
  0x8f   :  { %v227_v37 = vpop.f32.mrf.mxu2 }
  0x90   :  { %v242_v38 = vpop.f32.mrf.mxu3  ;;  %v228_v15 = vadd.f32 %v227_v37, %v88_v56 }
  0x91   :  { %v748_v39 = vpop.f32.mrf.mxu0  ;;  %v243_v40 = vadd.f32 %v242_v38, %v118_v35 }
  0x93   :  { %v541_v44 = vmul.f32 -1.442695, %v243_v40 }
  0x94   :  { %v68_v4 = vpop.permute.xlu0 %67 }
  0x95   :  { %571 = vpow2.f32 %v541_v44 }
  0x97   :  { %v229_v42 = vpop.f32.mrf.mxu2 }
  0x98   :  { %v244_v45 = vpop.f32.mrf.mxu3  ;;  %v230_v19 = vadd.f32 %v229_v42, %v93_v51 }
  0x99   :  { %v245_v47 = vadd.f32 %v244_v45, %v123_v43  ;;  %v217_v49 = vpop.f32.mrf.mxu0 }
  0x9a   :  { %v218_v29 = vadd.f32 %v217_v49, %v68_v4 }
  0x9b   :  { %v542_v48 = vmul.f32 -1.442695, %v245_v47  ;;  %v572_v54 = vpop.eup %571  ;;  %v73_v47 = vpop.permute.xlu1 %72 }
  0x9c   :  { %v752_v59 = vadd.f32 1.0, %v572_v54  ;;  %v63_v23 = vpop.permute.xlu0 %62 }
  0x9d   :  { %573 = vpow2.f32 %v542_v48  ;;  %v215_v31 = vadd.f32 %v748_v39, %v63_v23 }
  0x9e   :  { %vm357_vm1 = vweird.f32 %v752_v59  ;;  %v363_v49 = vand.u32 2147483648, %v752_v59 }
  0x9f   :  { %v232_v50 = vpop.f32.mrf.mxu2 }
  0xa0   :  { %v247_v52 = vpop.f32.mrf.mxu3  ;;  %v233_v55 = vadd.f32 %v232_v50, %v98_v41 }
  0xa1   :  { %v248_v53 = vadd.f32 %v247_v52, %v128_v32  ;;  %v756_v63 = vpop.f32.mrf.mxu0  ;;  %v58_v32 = vpop.permute.xlu2 %57 }
  0xa2   :  { %v537_v61 = vmul.f32 -1.442695, %v233_v55  ;;  %v787_v41 = vadd.f32 %v746_v33, %v58_v32  ;;  %v361_v33 = vand.u32 2147483647, %v752_v59  ;;  %v803_v51 = vadd.f32 %v756_v63, %v73_v47 }
  0xa3   :  { %v543_v57 = vmul.f32 -1.442695, %v248_v53  ;;  %v574_v58 = vpop.eup %573 }
  0xa4   :  { %v754_v62 = vadd.f32 1.0, %v574_v58  ;;  %vm362_vm15 = vcmp.eq.f32.partialorder %v361_v33, 8.507059e+37 }
  0xa5   :  { %575 = vpow2.f32 %v543_v57 }
  0xa6   :  { %577 = vrcp.f32 %v752_v59  ;;  %vm372_vm3 = vweird.f32 %v754_v62  ;;  %v376_v56 = vand.u32 2147483647, %v754_v62 }
  0xa7   :  { %v234_v0 = vpop.f32.mrf.mxu2  ;;  %579 = vpow2.f32 %v537_v61 }
  0xa8   :  { %v235_v1 = vadd.f32 %v234_v0, %v103_v60  ;;  %v249_v2 = vpop.f32.mrf.mxu3  ;;  %581 = vrcp.f32 %v754_v62  ;;  %vm377_vm0 = vcmp.eq.f32.partialorder %v376_v56, 8.507059e+37 }
  0xa9   :  { %v250_v3 = vadd.f32 %v249_v2, %v133_v34  ;;  %v222_v16 = vpop.f32.mrf.mxu0 }
  0xaa   :  { %v538_v5 = vmul.f32 -1.442695, %v235_v1  ;;  %v223_v52 = vadd.f32 %v222_v16, %v78_v18 }
  0xab   :  { %v576_v6 = vpop.eup %575  ;;  %v544_v7 = vmul.f32 -1.442695, %v250_v3 }
  0xac   :  { %v760_v8 = vadd.f32 1.0, %v576_v6  ;;  %583 = vpow2.f32 %v538_v5  ;;  %v763_v10 = vpop.eup %577 }
  0xad   :  { %v580_v12 = vpop.eup %579  ;;  %v353_v24 = vmul.f32 %v763_v10, %v752_v59  ;;  %vm358_vm2 = vweird.f32 %v763_v10 }
  0xae   :  { %585 = vrcp.f32 %v760_v8  ;;  %v765_v14 = vpop.eup %581  ;;  %v767_v21 = vadd.f32 1.0, %v580_v12  ;;  %vm387_vm4 = vweird.f32 %v760_v8  ;;  %v391_v63 = vand.u32 2147483647, %v760_v8  ;;  %vm848_vm9 = vmor %vm357_vm1, %vm358_vm2 }
  0xaf   :  { %587 = vpow2.f32 %v544_v7  ;;  %v237_v11 = vpop.f32.mrf.mxu2  ;;  %v368_v28 = vmul.f32 %v765_v14, %v754_v62  ;;  %v354_v37 = vsub.f32 1.0, %v353_v24  ;;  %v393_v0 = vand.u32 2147483648, %v760_v8 }
  0xb0   :  { %v238_v13 = vadd.f32 %v237_v11, %v108_v36  ;;  %vm373_vm6 = vweird.f32 %v765_v14  ;;  %vm392_vm10 = vcmp.eq.f32.partialorder %v391_v63, 8.507059e+37 }
  0xb1   :  { %v369_v38 = vsub.f32 1.0, %v368_v28  ;;  %v224_v44 = vpop.f32.mrf.mxu0  ;;  %v355_v48 = vmul.f32 %v763_v10, %v354_v37  ;;  %v394_v18 = vor.u32 1.1754944e-38, %v393_v0  ;;  %vm864_vm12 = vmor %vm372_vm3, %vm373_vm6 }
  0xb2   :  { %v584_v17 = vpop.eup %583  ;;  %v539_v20 = vmul.f32 -1.442695, %v238_v13  ;;  %v225_v55 = vadd.f32 %v224_v44, %v83_v9 }
  0xb3   :  { %v773_v26 = vadd.f32 1.0, %v584_v17  ;;  %v370_v53 = vmul.f32 %v765_v14, %v369_v38  ;;  %v356_v1 = vadd.f32 %v763_v10, %v355_v48 }
  0xb4   :  { %v769_v22 = vpop.eup %585  ;;  %589 = vpow2.f32 %v539_v20  ;;  %v378_v20 = vand.u32 2147483648, %v754_v62  ;;  %v364_v62 = vor.u32 1.1754944e-38, %v363_v49 }
  0xb5   :  { %v588_v25 = vpop.eup %587  ;;  %591 = vtanh.f32 %v228_v15  ;;  %v383_v27 = vmul.f32 %v769_v22, %v760_v8  ;;  %vm388_vm5 = vweird.f32 %v769_v22  ;;  %v371_v4 = vadd.f32 %v765_v14, %v370_v53 }
  0xb6   :  { %593 = vtanh.f32 %v230_v19  ;;  %v779_v30 = vadd.f32 1.0, %v588_v25  ;;  %vm829_vm7 = vmor %vm387_vm4, %vm388_vm5  ;;  %v360_v19 = vsel %vm848_vm9, %v763_v10, %v356_v1  ;;  %vm312_vm3 = vweird.f32 %v773_v26 }
  0xb7   :  { %595 = vrcp.f32 %v767_v21  ;;  %v239_v34 = vpop.f32.mrf.mxu2  ;;  %v384_v35 = vsub.f32 1.0, %v383_v27  ;;  %v318_v63 = vand.u32 2147483648, %v773_v26 }
  0xb8   :  { %597 = vrcp.f32 %v779_v30  ;;  %v240_v36 = vadd.f32 %v239_v34, %v750_v46  ;;  %v406_v9 = vand.u32 2147483647, %v779_v30  ;;  %v408_v11 = vand.u32 2147483648, %v779_v30 }
  0xb9   :  { %599 = vrcp.f32 %v773_v26  ;;  %v385_v45 = vmul.f32 %v769_v22, %v384_v35  ;;  %vm402_vm11 = vweird.f32 %v779_v30 }
  0xba   :  { %v590_v40 = vpop.eup %589  ;;  %601 = vtanh.f32 %v218_v29  ;;  %v540_v42 = vmul.f32 -1.442695, %v240_v36  ;;  %v409_v25 = vor.u32 1.1754944e-38, %v408_v11  ;;  %vm407_vm14 = vcmp.eq.f32.partialorder %v406_v9, 8.507059e+37 }
  0xbb   :  { %v789_v39 = vpop.eup %591  ;;  %603 = vtanh.f32 %v215_v31  ;;  %v791_v43 = vadd.f32 1.0, %v590_v40  ;;  %v386_v58 = vadd.f32 %v769_v22, %v385_v45  ;;  %v379_v36 = vor.u32 1.1754944e-38, %v378_v20 }
  0xbc   :  { %v795_v46 = vpop.eup %593  ;;  %605 = vpow2.f32 %v540_v42  ;;  %v365_v42 = vsel %vm362_vm15, %v364_v62, %v360_v19 }
  0xbd   :  { %v800_v50 = vpop.eup %595  ;;  %607 = vrcp.f32 %v791_v43  ;;  %v390_v16 = vsel %vm829_vm7, %v769_v22, %v386_v58  ;;  %v333_v33 = vand.u32 2147483648, %v791_v43  ;;  %vm327_vm5 = vweird.f32 %v791_v43 }
  0xbe   :  { %v598_v54 = vpop.eup %597  ;;  %609 = vtanh.f32 %v223_v52  ;;  %v293_v5 = vmul.f32 %v800_v50, %v767_v21  ;;  %v395_v10 = vsel %vm392_vm10, %v394_v18, %v390_v16  ;;  %vm298_vm1 = vweird.f32 %v800_v50 }
  0xbf   :  { %v810_v57 = vpop.eup %599  ;;  %v398_v60 = vmul.f32 %v598_v54, %v779_v30  ;;  %611 = vtanh.f32 %v225_v55  ;;  %vm403_vm8 = vweird.f32 %v598_v54  ;;  %v375_v30 = vsel %vm864_vm12, %v765_v14, %v371_v4 }
  0xc0   :  { %v816_v61 = vpop.eup %601  ;;  %v308_v12 = vmul.f32 %v810_v57, %v773_v26  ;;  %vm404_vm13 = vmor %vm402_vm11, %vm403_vm8  ;;  %v294_v32 = vsub.f32 1.0, %v293_v5  ;;  %v418_v38 = vmul.f32 %v789_v39, %v395_v10  ;;  %v380_v44 = vsel %vm377_vm0, %v379_v36, %v375_v30  ;;  %v445_v30 = vpop.permute.xlu0 %444 }
  0xc1   :  { %v822_v2 = vpop.eup %603  ;;  %v399_v3 = vsub.f32 1.0, %v398_v60  ;;  %vm313_vm4 = vweird.f32 %v810_v57  ;;  %v331_v52 = vand.u32 2147483647, %v791_v43  ;;  %v334_v4 = vor.u32 1.1754944e-38, %v333_v33 }
  0xc2   :  { %v606_v6 = vpop.eup %605  ;;  %v309_v28 = vsub.f32 1.0, %v308_v12  ;;  %v295_v49 = vmul.f32 %v800_v50, %v294_v32  ;;  %vm297_vm8 = vweird.f32 %v767_v21  ;;  %v301_v5 = vand.u32 2147483647, %v767_v21  ;;  %vm908_vm9 = vmor %vm312_vm3, %vm313_vm4 }
  0xc3   :  { %v837_v13 = vpop.eup %607  ;;  %v839_v15 = vadd.f32 1.0, %v606_v6  ;;  %v400_v8 = vmul.f32 %v598_v54, %v399_v3  ;;  %v303_v6 = vand.u32 2147483648, %v767_v21  ;;  %vm332_vm10 = vcmp.eq.f32.partialorder %v331_v52, 8.507059e+37  ;;  %vm915_vm12 = vmor %vm297_vm8, %vm298_vm1 }
  0xc4   :  { %v323_v22 = vmul.f32 %v837_v13, %v791_v43  ;;  %v610_v29 = vpop.eup %609  ;;  %v310_v14 = vmul.f32 %v810_v57, %v309_v28  ;;  %vm328_vm2 = vweird.f32 %v837_v13  ;;  %v296_v60 = vadd.f32 %v800_v50, %v295_v49  ;;  %v440_v28 = vpop.permute.xlu2 %439 }
  0xc5   :  { %613 = vrcp.f32 %v839_v15  ;;  %v401_v23 = vadd.f32 %v598_v54, %v400_v8  ;;  %v612_v34 = vpop.eup %611  ;;  %v416_v39 = vmul.f32 %v610_v29, %v365_v42  ;;  %vm890_vm6 = vmor %vm327_vm5, %vm328_vm2  ;;  %v348_v58 = vand.u32 2147483648, %v839_v15 }
  0xc6   :  { %v324_v27 = vsub.f32 1.0, %v323_v22  ;;  %615 = vtanh.f32 %v803_v51  ;;  %v417_v48 = vmul.f32 %v612_v34, %v380_v44  ;;  %v316_v51 = vand.u32 2147483647, %v773_v26 }
  0xc7   :  { %v405_v31 = vsel %vm404_vm13, %v598_v54, %v401_v23  ;;  %v311_v54 = vadd.f32 %v810_v57, %v310_v14  ;;  %v346_v3 = vand.u32 2147483647, %v839_v15  ;;  %vm342_vm11 = vweird.f32 %v839_v15 }
  0xc8   :  { %v410_v35 = vsel %vm407_vm14, %v409_v25, %v405_v31  ;;  %v325_v37 = vmul.f32 %v837_v13, %v324_v27  ;;  %v426_v55 = vpack.c.bf16 %v417_v48, %v416_v39  ;;  %617 = vtanh.f32 %v787_v41  ;;  %v435_v25 = vpop.permute.xlu1 %434 }
  0xc9   :  { %v419_v40 = vmul.f32 %v795_v46, %v410_v35  ;;  %v315_v21 = vsel %vm908_vm9, %v810_v57, %v311_v54  ;;  %v349_v12 = vor.u32 1.1754944e-38, %v348_v58  ;;  %vm347_vm14 = vcmp.eq.f32.partialorder %v346_v3, 8.507059e+37 }
  0xca   :  { %v326_v46 = vadd.f32 %v837_v13, %v325_v37  ;;  %vm317_vm15 = vcmp.eq.f32.partialorder %v316_v51, 8.507059e+37  ;;  %v304_v17 = vor.u32 1.1754944e-38, %v303_v6  ;;  %vm302_vm0 = vcmp.eq.f32.partialorder %v301_v5, 8.507059e+37 }
  0xcb   :  { %v614_v45 = vpop.eup %613  ;;  %v427_v47 = vpack.c.bf16 %v419_v40, %v418_v38  ;;  %vm462_vm1 = vcmask 523264   ;;  %vm488_vm2 = vcmask 64512  }
  0xcc   :  { %v338_v59 = vmul.f32 %v614_v45, %v839_v15  ;;  %v616_v0 = vpop.eup %615  ;;  %v330_v1 = vsel %vm890_vm6, %v837_v13, %v326_v46  ;;  %vm343_vm7 = vweird.f32 %v614_v45  ;;  %v319_v13 = vor.u32 1.1754944e-38, %v318_v63 }
  0xcd   :  { %473 = vmatpush.bf16.msra.mxu1 %v427_v47  ;;  %v335_v26 = vsel %vm332_vm10, %v334_v4, %v330_v1  ;;  %vm344_vm13 = vmor %vm342_vm11, %vm343_vm7  ;;  %v300_v15 = vsel %vm915_vm12, %v800_v50, %v296_v60  ;;  %v563_v50 = vld [vmem:[%s951_s3] sm:$0xff] }
  0xce   :  { %v339_v53 = vsub.f32 1.0, %v338_v59  ;;  %v320_v18 = vsel %vm317_vm15, %v319_v13, %v315_v21  ;;  %v414_v19 = vmul.f32 %v816_v61, %v335_v26  ;;  %v305_v41 = vsel %vm302_vm0, %v304_v17, %v300_v15  ;;  %v618_v23 = vpop.eup %617  ;;  %v564_v61 = vld [vmem:[%s951_s3 + $0x8] sm:$0xff] }
  0xcf   :  { %v413_v22 = vmul.f32 %v822_v2, %v320_v18  ;;  %v412_v24 = vmul.f32 %v618_v23, %v305_v41 }
  0xd0   :  { %v340_v43 = vmul.f32 %v614_v45, %v339_v53  ;;  %v450_v35 = vpop.permute.xlu1 %449 }
  0xd1   :  { %474 = vmatpush.bf16.msra.mxu1 %v426_v55  ;;  %v424_v10 = vpack.c.bf16 %v413_v22, %v412_v24 }
  0xd2   :  { %v341_v9 = vadd.f32 %v614_v45, %v340_v43 }
  0xd4   :  { %v345_v16 = vsel %vm344_vm13, %v614_v45, %v341_v9 }
  0xd5   :  { %v350_v8 = vsel %vm347_vm14, %v349_v12, %v345_v16 }
  0xd6   :  { %v415_v57 = vmul.f32 %v616_v0, %v350_v8 }
  0xd8   :  { %v425_v20 = vpack.c.bf16 %v415_v57, %v414_v19 }
  0xda   :  { %475 = vmatpush.bf16.msra.mxu1 %v425_v20 }
  0xde   :  { %476 = vmatpush.bf16.msra.mxu1 %v424_v10 }
  0xe1   :  { %553 = vmatmul.msk.bf16.vlgmr.msra.gmra.mxu1 %vm462_vm1, %v563_v50 }
  0xf1   :  { %554 = vmatmul.msk.bf16.gmra.mxu1 %vm462_vm1, %v564_v61 }
 0x15e   :  { %v478_v27 = vpop.f32.mrf.mxu1 }
 0x15f   :  { %v479_v2 = vadd.f32 %v478_v27, %v435_v25 }
 0x161   :  { %489 = vst.msk [vmem:[%s952_s5] sm:$0xff] %vm488_vm2, %v479_v2 }
 0x166   :  { %v480_v29 = vpop.f32.mrf.mxu1 }
 0x167   :  { %v481_v31 = vadd.f32 %v480_v29, %v440_v28 }
 0x169   :  { %490 = vst.msk [vmem:[%s952_s5 + $0x8] sm:$0xff] %vm488_vm2, %v481_v31 }
 0x16e   :  { %v483_v32 = vpop.f32.mrf.mxu1 }
 0x16f   :  { %v484_v34 = vadd.f32 %v483_v32, %v445_v30 }
 0x171   :  { %491 = vst.msk [vmem:[%s952_s5 + $0x10] sm:$0xff] %vm488_vm2, %v484_v34 }
 0x176   :  { %v485_v62 = vpop.f32.mrf.mxu1 }
 0x177   :  { %v486_v36 = vadd.f32 %v485_v62, %v450_v35 }
 0x179   :  { %492 = vst.msk [vmem:[%s952_s5 + $0x18] sm:$0xff] %vm488_vm2, %v486_v36 }

</bundles_post_ra>
